<compile_context>
chip_gen: v7x
topology: tpu7x:2x2x1
jax: 0.10.0
libtpu: 0.0.40
codegen_flags: <defaults>
</compile_context>

<pallas_src>
import numpy as np
import jax
import jax.numpy as jnp
from jax import lax
from jax.experimental import pallas as pl
from jax.experimental.pallas import tpu as pltpu


def _round_up(x, m):
    return (x + m - 1) // m * m


def _make_act(act_type):
    if act_type == "relu":
        return lambda v: jnp.maximum(v, 0.0)
    if act_type == "tanh":
        return jnp.tanh
    if act_type == "sigmoid":
        # exp and the approximate reciprocal both land on the EUP slot, which
        # is otherwise idle here.  NOTE: approx=True is an accuracy/perf
        # trade; the __main__ check below uses relu.
        return lambda v: pl.reciprocal(1.0 + jnp.exp(-v), approx=True)
    if act_type is None:
        return lambda v: v
    raise ValueError(f"unknown act_type: {act_type}")


def _make_kernel(act_type):
    """Fused (per pool quadrant) matmul + folded-BN bias + act + 2x2 max-pool."""
    act = _make_act(act_type)

    def kernel(p_ref, w_ref, b_ref, out_ref):
        # p_ref:   (4, K_pad, tile_q)  transposed im2col patches; leading axis
        #                              is the 2x2 pool quadrant (dh, dw),
        #                              lanes are pooled rows (n, ph, pw).
        # w_ref:   (Cp, K_pad)         conv weights^T with BN scale pre-folded
        # b_ref:   (Cp, 1)             folded conv-bias + BN bias
        # out_ref: (Cp, tile_q)        pooled output, lanes = (n, ph, pw)
        w = w_ref[...]
        b = b_ref[...]

        def head(q):
            # One MXU matmul per pool quadrant; output is lane-dense
            # (Cp sublanes x tile_q lanes), so bias/act/max/store all run on
            # fully occupied vregs and the store is an unmasked vst.
            y = jnp.dot(w, p_ref[q], preferred_element_type=jnp.float32)
            return act(y + b)

        out_ref[...] = jnp.maximum(jnp.maximum(head(0), head(1)),
                                   jnp.maximum(head(2), head(3))
                                   ).astype(out_ref.dtype)

    return kernel


def conv_bn_act_pool(x_nchw, w_oihw, conv_b, gamma, beta, run_mean, run_var,
                     *, eps=1e-5, act_type="relu"):
    """Pallas implementation of ConvBnActPool.forward (eval-mode BN)."""
    N, C_in, H, W = x_nchw.shape
    C_out, _, KH, KW = w_oihw.shape
    H_out, W_out = H - KH + 1, W - KW + 1
    P_h, P_w = H_out // 2, W_out // 2            # MaxPool2d(2) floors, like PyTorch
    K = KH * KW * C_in
    Np = N * P_h * P_w                           # valid pooled rows

    LANE = 128
    Cp = _round_up(C_out, 8)                     # sublane-aligned output channels
    K_pad = _round_up(K, 8)                      # sublane-aligned contraction dim
    Mq = _round_up(Np, LANE)                     # lane-aligned pooled rows
    # Biggest lane tile (<= 512 pooled rows) that divides Mq: one grid step at
    # this size, >= 2 parallel steps (v7x megacore + DMA pipelining) once the
    # batch grows.  The double-buffered patch block is 4*K_pad*tile_q*4 bytes
    # (~0.8 MiB at tile_q=512), far below the 16/32 MiB scoped-VMEM defaults
    # of v5e/v6e/v7x, so vmem_limit_bytes is left at its default.
    tile_q = next(t for t in (512, 256, 128) if Mq % t == 0)
    grid = (Mq // tile_q,)

    x = jnp.transpose(x_nchw, (0, 2, 3, 1)).astype(jnp.float32)   # NHWC

    # Fold BN (inference) into the conv:
    #   bn(conv(x)) = (patches^T @ (w*scale)^T)^T + (beta + (conv_b - mean)*scale)
    scale = (gamma / jnp.sqrt(run_var + eps)).astype(jnp.float32)
    bias = (beta + (conv_b - run_mean) * scale).astype(jnp.float32)
    bias = jnp.pad(bias, (0, Cp - C_out)).reshape(Cp, 1)

    # Transposed, BN-folded weights: w_t[co, (kh,kw,ci)] = w[co,ci,kh,kw]*scale[co]
    w_t = jnp.transpose(w_oihw, (0, 2, 3, 1)).astype(jnp.float32).reshape(C_out, K)
    w_t = w_t * scale[:, None]
    w_t = jnp.pad(w_t, ((0, Cp - C_out), (0, K_pad - K)))

    # Transposed im2col in the wrapper (XLA fuses transpose + gather):
    #   patches[(dh,dw), (kh,kw,ci), (n,ph,pw)] = x[n, 2*ph+dh+kh, 2*pw+dw+kw, ci]
    # so each pool quadrant is a 128-lane-aligned, lane-dense RHS slab.
    cols = [x[:, kh:kh + H_out, kw:kw + W_out, :]
            for kh in range(KH) for kw in range(KW)]
    patches = jnp.stack(cols, axis=0)                    # (KH*KW, N, H_out, W_out, C_in)
    patches = patches[:, :, :2 * P_h, :2 * P_w, :]       # MaxPool floor behavior
    patches = patches.reshape(KH * KW, N, P_h, 2, P_w, 2, C_in)
    patches = jnp.transpose(patches, (3, 5, 0, 6, 1, 2, 4))   # (2,2,KH*KW,C_in,N,P_h,P_w)
    patches = patches.reshape(4, K, Np)
    patches = jnp.pad(patches, ((0, 0), (0, K_pad - K), (0, Mq - Np)))

    kernel = _make_kernel(act_type)

    out_t = pl.pallas_call(
        kernel,
        out_shape=jax.ShapeDtypeStruct((Cp, Mq), jnp.float32),
        grid_spec=pltpu.PrefetchScalarGridSpec(
            num_scalar_prefetch=0,
            grid=grid,
            in_specs=[
                pl.BlockSpec((4, K_pad, tile_q), lambda i: (0, 0, i)),
                pl.BlockSpec((Cp, K_pad), lambda i: (0, 0)),
                pl.BlockSpec((Cp, 1), lambda i: (0, 0)),
            ],
            out_specs=pl.BlockSpec((Cp, tile_q), lambda i: (0, i)),
        ),
        compiler_params=pltpu.CompilerParams(
            dimension_semantics=("parallel",)),
    )(patches, w_t, bias)

    # Drop channel/row padding, restore (N, C_out, P_h, P_w).
    out = out_t[:C_out, :Np].reshape(C_out, N, P_h, P_w)
    return jnp.transpose(out, (1, 0, 2, 3))


def _reference(x_nchw, w_oihw, conv_b, gamma, beta, run_mean, run_var,
               *, eps=1e-5, act_type="relu"):
    """Pure-JAX (XLA) reference with identical semantics, for validation."""
    y = lax.conv_general_dilated(
        x_nchw, w_oihw, window_strides=(1, 1), padding="VALID",
        dimension_numbers=("NCHW", "OIHW", "NCHW"),
        precision=lax.Precision.HIGHEST)
    y = y + conv_b[None, :, None, None]
    y = (y - run_mean[None, :, None, None]) / jnp.sqrt(run_var + eps)[None, :, None, None]
    y = y * gamma[None, :, None, None] + beta[None, :, None, None]
    if act_type == "relu":
        y = jnp.maximum(y, 0.0)
    elif act_type == "tanh":
        y = jnp.tanh(y)
    elif act_type == "sigmoid":
        y = 1.0 / (1.0 + jnp.exp(-y))
    y = lax.reduce_window(y, -jnp.inf, lax.max,
                          window_dimensions=(1, 1, 2, 2),
                          window_strides=(1, 1, 2, 2),
                          padding="VALID")
    return y


if __name__ == "__main__":
    key = jax.random.PRNGKey(0)
    k_x, k_w, k_b = jax.random.split(key, 3)

    # Shapes implied by the module: Conv2d(10, 20, 3); pick N=2, H=W=16.
    N, C_in, H, W = 2, 10, 16, 16
    C_out, KH, KW = 20, 3, 3
    act_type = "relu"  # act_as_module only changes how the act is stored, not semantics

    x = jax.random.normal(k_x, (N, C_in, H, W), dtype=jnp.float32)

    # Deterministic synthetic parameters.
    w_oihw = 0.1 * jax.random.normal(k_w, (C_out, C_in, KH, KW), dtype=jnp.float32)
    conv_b = 0.05 * jax.random.normal(k_b, (C_out,), dtype=jnp.float32)
    gamma = 1.0 + 0.05 * jnp.arange(C_out, dtype=jnp.float32)
    beta = 0.02 * jnp.arange(C_out, dtype=jnp.float32) - 0.1
    run_mean = 0.01 * jnp.arange(C_out, dtype=jnp.float32)
    run_var = 0.5 + 0.03 * jnp.arange(C_out, dtype=jnp.float32)

    out = conv_bn_act_pool(x, w_oihw, conv_b, gamma, beta, run_mean, run_var,
                           act_type=act_type)
    out = jax.block_until_ready(out)

    ref = _reference(x, w_oihw, conv_b, gamma, beta, run_mean, run_var,
                     act_type=act_type)
    ref = jax.block_until_ready(ref)

    assert out.shape == (N, C_out, (H - 2) // 2, (W - 2) // 2), out.shape
    np.testing.assert_allclose(np.asarray(out), np.asarray(ref), rtol=1e-4, atol=1e-4)

    print("KERNEL_OK")
</pallas_src>

<mosaic_0001>
module attributes {stable_mosaic.version = 11 : i64} {
  func.func @kernel(%arg0: i32, %arg1: memref<4x96x128xf32, #tpu.memory_space<vmem>>, %arg2: memref<24x96xf32, #tpu.memory_space<vmem>>, %arg3: memref<24x1xf32, #tpu.memory_space<vmem>>, %arg4: memref<24x128xf32, #tpu.memory_space<vmem>>) attributes {dimension_semantics = [#tpu.dimension_semantics<parallel>], iteration_bounds = array<i64: 1>, scalar_prefetch = 0 : i64, scratch_operands = 0 : i64, tpu.core_type = #tpu.core_type<tc>, window_params = [{transform_indices = @transform_0, window_bounds = array<i64: 4, 96, 128>}, {pipeline_mode = #tpu.pipeline_mode<synchronous>, transform_indices = @transform_1, window_bounds = array<i64: 24, 96>}, {pipeline_mode = #tpu.pipeline_mode<synchronous>, transform_indices = @transform_2, window_bounds = array<i64: 24, 1>}, {transform_indices = @transform_3, window_bounds = array<i64: 24, 128>}]} {
    %c0 = arith.constant 0 : index
    %c0_0 = arith.constant 0 : index
    %0 = vector.load %arg2[%c0, %c0_0] : memref<24x96xf32, #tpu.memory_space<vmem>>, vector<24x96xf32>
    %c0_1 = arith.constant 0 : index
    %c0_2 = arith.constant 0 : index
    %1 = vector.load %arg3[%c0_1, %c0_2] : memref<24x1xf32, #tpu.memory_space<vmem>>, vector<24x1xf32>
    %c0_3 = arith.constant 0 : index
    %c0_4 = arith.constant 0 : index
    %c0_5 = arith.constant 0 : index
    %2 = vector.load %arg1[%c0_3, %c0_4, %c0_5] : memref<4x96x128xf32, #tpu.memory_space<vmem>>, vector<1x96x128xf32>
    %3 = vector.shape_cast %2 : vector<1x96x128xf32> to vector<96x128xf32>
    %cst = arith.constant dense<0.000000e+00> : vector<24x128xf32>
    %4 = tpu.matmul %0, %3, %cst {dimension_numbers = #tpu.dot_dimension_numbers<[1], [0], [0], [1], [0, 0, 1, 1], [], []>} : vector<24x96xf32>, vector<96x128xf32>, vector<24x128xf32> -> vector<24x128xf32>
    %5 = vector.broadcast %1 : vector<24x1xf32> to vector<24x128xf32>
    %6 = arith.addf %4, %5 : vector<24x128xf32>
    %cst_6 = arith.constant 0.000000e+00 : f32
    %7 = vector.broadcast %cst_6 : f32 to vector<24x128xf32>
    %8 = arith.maximumf %6, %7 : vector<24x128xf32>
    %c1 = arith.constant 1 : index
    %c0_7 = arith.constant 0 : index
    %c0_8 = arith.constant 0 : index
    %9 = vector.load %arg1[%c1, %c0_7, %c0_8] : memref<4x96x128xf32, #tpu.memory_space<vmem>>, vector<1x96x128xf32>
    %10 = vector.shape_cast %9 : vector<1x96x128xf32> to vector<96x128xf32>
    %cst_9 = arith.constant dense<0.000000e+00> : vector<24x128xf32>
    %11 = tpu.matmul %0, %10, %cst_9 {dimension_numbers = #tpu.dot_dimension_numbers<[1], [0], [0], [1], [0, 0, 1, 1], [], []>} : vector<24x96xf32>, vector<96x128xf32>, vector<24x128xf32> -> vector<24x128xf32>
    %12 = vector.broadcast %1 : vector<24x1xf32> to vector<24x128xf32>
    %13 = arith.addf %11, %12 : vector<24x128xf32>
    %cst_10 = arith.constant 0.000000e+00 : f32
    %14 = vector.broadcast %cst_10 : f32 to vector<24x128xf32>
    %15 = arith.maximumf %13, %14 : vector<24x128xf32>
    %16 = arith.maximumf %8, %15 : vector<24x128xf32>
    %c2 = arith.constant 2 : index
    %c0_11 = arith.constant 0 : index
    %c0_12 = arith.constant 0 : index
    %17 = vector.load %arg1[%c2, %c0_11, %c0_12] : memref<4x96x128xf32, #tpu.memory_space<vmem>>, vector<1x96x128xf32>
    %18 = vector.shape_cast %17 : vector<1x96x128xf32> to vector<96x128xf32>
    %cst_13 = arith.constant dense<0.000000e+00> : vector<24x128xf32>
    %19 = tpu.matmul %0, %18, %cst_13 {dimension_numbers = #tpu.dot_dimension_numbers<[1], [0], [0], [1], [0, 0, 1, 1], [], []>} : vector<24x96xf32>, vector<96x128xf32>, vector<24x128xf32> -> vector<24x128xf32>
    %20 = vector.broadcast %1 : vector<24x1xf32> to vector<24x128xf32>
    %21 = arith.addf %19, %20 : vector<24x128xf32>
    %cst_14 = arith.constant 0.000000e+00 : f32
    %22 = vector.broadcast %cst_14 : f32 to vector<24x128xf32>
    %23 = arith.maximumf %21, %22 : vector<24x128xf32>
    %c3 = arith.constant 3 : index
    %c0_15 = arith.constant 0 : index
    %c0_16 = arith.constant 0 : index
    %24 = vector.load %arg1[%c3, %c0_15, %c0_16] : memref<4x96x128xf32, #tpu.memory_space<vmem>>, vector<1x96x128xf32>
    %25 = vector.shape_cast %24 : vector<1x96x128xf32> to vector<96x128xf32>
    %cst_17 = arith.constant dense<0.000000e+00> : vector<24x128xf32>
    %26 = tpu.matmul %0, %25, %cst_17 {dimension_numbers = #tpu.dot_dimension_numbers<[1], [0], [0], [1], [0, 0, 1, 1], [], []>} : vector<24x96xf32>, vector<96x128xf32>, vector<24x128xf32> -> vector<24x128xf32>
    %27 = vector.broadcast %1 : vector<24x1xf32> to vector<24x128xf32>
    %28 = arith.addf %26, %27 : vector<24x128xf32>
    %cst_18 = arith.constant 0.000000e+00 : f32
    %29 = vector.broadcast %cst_18 : f32 to vector<24x128xf32>
    %30 = arith.maximumf %28, %29 : vector<24x128xf32>
    %31 = arith.maximumf %23, %30 : vector<24x128xf32>
    %32 = arith.maximumf %16, %31 : vector<24x128xf32>
    %c0_19 = arith.constant 0 : index
    %c0_20 = arith.constant 0 : index
    %33 = vector.load %arg4[%c0_19, %c0_20] : memref<24x128xf32, #tpu.memory_space<vmem>>, vector<24x128xf32>
    tpu.vector_store %arg4[%c0_19, %c0_20], %32 {strides = array<i32>} : memref<24x128xf32, #tpu.memory_space<vmem>>, vector<24x128xf32>,
    return
  }
  func.func @transform_0(%arg0: i32) -> (i32, i32, i32) {
    %c0_i32 = arith.constant 0 : i32
    %c0_i32_0 = arith.constant 0 : i32
    %c0_i32_1 = arith.constant 0 : i32
    return %c0_i32, %c0_i32_0, %arg0 : i32, i32, i32
  }
  func.func @transform_1(%arg0: i32) -> (i32, i32) {
    %c0_i32 = arith.constant 0 : i32
    %c0_i32_0 = arith.constant 0 : i32
    %c0_i32_1 = arith.constant 0 : i32
    return %c0_i32, %c0_i32_0 : i32, i32
  }
  func.func @transform_2(%arg0: i32) -> (i32, i32) {
    %c0_i32 = arith.constant 0 : i32
    %c0_i32_0 = arith.constant 0 : i32
    %c0_i32_1 = arith.constant 0 : i32
    return %c0_i32, %c0_i32_0 : i32, i32
  }
  func.func @transform_3(%arg0: i32) -> (i32, i32) {
    %c0_i32 = arith.constant 0 : i32
    %c0_i32_0 = arith.constant 0 : i32
    return %c0_i32, %arg0 : i32, i32
  }
}

</mosaic_0001>

<bundles_post_ra>
// kernel: tpu_custom_call.1
= control target key start
LH: loop header
LB: loop body
LE: loop exit
PB: predicated region body
PF: predicated region fallthrough
CT: control target
= control target key end

     0   :  { %8 = vsyncpa [#allocation3], 0  ;;  %s954_s0 = inlined_call_operand.hbm [shape: f32[4,96,128], index: 0, kind: input, shape index: {}]   ;;  %s955_s1 = inlined_call_operand.vmem [shape: f32[24,96], index: 1, kind: input, shape index: {}]   ;;  %s956_s2 = inlined_call_operand.vmem [shape: f32[24,1], index: 2, kind: input, shape index: {}]   ;;  %s957_s3 = inlined_call_operand.hbm [shape: f32[24,128], index: 3, kind: output, shape index: {}]  }
   0x1   :  { %9 = vsyncpa [#allocation4], 0  ;;  %s806_s12 = smov [#allocation2]   ;;  %s758_s16 = scalar_lea.hbm %s954_s0, 6144 }
   0x2   :  { %s15_s13 = sshll.u32 %s806_s12, 4  ;;  %p759_p0 = scmp.ne.s32.totalorder %s954_s0, %s758_s16  ;;  %s16_s13 = int_to_ptr.vmem [resolvable:$true] %s15_s13 }
   0x3   :  { %p762_p1 = scmp.lt.u32.totalorder %s758_s16, %s954_s0 }
   0x5   :  { %p764_p2 = pnand %p762_p1, %p759_p0 }
   0x7   :  { %767 = shalt.err (!%p764_p2)
}
   0x8   :  { %s768_s21 = scalar_lea.vmem %s16_s13, 6144  ;;  %p773_p4 = scmp.lt.s32.totalorder %s16_s13, %s16_s13 }
   0x9   :  { %p769_p3 = scmp.ne.s32.totalorder %s16_s13, %s768_s21  ;;  %p774_p5 = scmp.lt.s32.totalorder %s768_s21, %s768_s21 }
   0xb   :  { %p775_p6 = por %p774_p5, %p773_p4 }
   0xd   :  { %p776_p7 = pnand %p775_p6, %p769_p3 }
   0xf   :  { %779 = shalt.err (!%p776_p7)
}
  0x10   :  { %s807_s22 = smov 128   ;;  %s808_s23 = smov 8  }
  0x11   :  { %21 = dma.hbm_to_vmem [thread:$0]  %s954_s0, 6144, %s16_s13, [#allocation3], %s807_s22, %s807_s22, %s808_s23  }
  0x12   :  { %802 = dma.done.wait [#allocation3], 6144  }
  0x13   :  { %803 = vsyncadd [#allocation3], 4294961152  ;;  %v809_v0 = vmov 0.0|0.0   ;;  %vm810_vm0 = vmmov 0   ;;  %v811_v1 = vmov 0.0   ;;  %v812_v2 = vmov 0  }
  0x14   :  { %676 = vmatprep.subr.bf16.mxu0 %v809_v0  ;;  %694 = vmatprep.subr.bf16.mxu1 %v809_v0  ;;  %v35_v3 = vld [vmem:[#allocation2] sm:$0xff]  ;;  %v36_v4 = vld [vmem:[#allocation2 + $0x8] sm:$0xff]  ;;  %v37_v8 = vld [vmem:[#allocation2 + $0x10] sm:$0xff]  ;;  %vm62_vm1 = vcmask 785408  }
  0x15   :  { %568 = vmatprep.mubr.msk.f32.mxu0 %vm810_vm0, %v811_v1  ;;  %601 = vmatprep.mubr.msk.f32.mxu1 %vm810_vm0, %v811_v1  ;;  %v156_v5 = vld [vmem:[#allocation2 + $0x60] sm:$0xff]  ;;  %v677_v6 = vpack.c.bf16 %v36_v4, %v35_v3  ;;  %v157_v7 = vld [vmem:[#allocation2 + $0x68] sm:$0xff]  ;;  %v38_v9 = vld [vmem:[#allocation2 + $0x18] sm:$0xff] }
  0x16   :  { %756 = vset.pattern.permute.xlu0 %v812_v2  ;;  %757 = vset.pattern.permute.xlu1 %v812_v2  ;;  %v695_v10 = vpack.c.bf16 %v157_v7, %v156_v5  ;;  %v158_v11 = vld [vmem:[#allocation2 + $0x70] sm:$0xff]  ;;  %v159_v12 = vld [vmem:[#allocation2 + $0x78] sm:$0xff]  ;;  %v680_v13 = vpack.c.bf16 %v38_v9, %v37_v8  ;;  %v39_v15 = vld [vmem:[#allocation2 + $0x20] sm:$0xff] }
  0x17   :  { %678 = vmatpush3.bf16.msra.mxu0 %v677_v6  ;;  %v698_v14 = vpack.c.bf16 %v159_v12, %v158_v11  ;;  %v40_v16 = vld [vmem:[#allocation2 + $0x28] sm:$0xff]  ;;  %v160_v17 = vld [vmem:[#allocation2 + $0x80] sm:$0xff]  ;;  %v41_v21 = vld [vmem:[#allocation2 + $0x30] sm:$0xff] }
  0x18   :  { %696 = vmatpush3.bf16.msra.mxu1 %v695_v10  ;;  %679 = vmatprep.subr.bf16.mxu0 %v809_v0  ;;  %v161_v18 = vld [vmem:[#allocation2 + $0x88] sm:$0xff]  ;;  %v683_v19 = vpack.c.bf16 %v40_v16, %v39_v15  ;;  %v42_v22 = vld [vmem:[#allocation2 + $0x38] sm:$0xff]  ;;  %v162_v23 = vld [vmem:[#allocation2 + $0x90] sm:$0xff] }
  0x19   :  { %697 = vmatprep.subr.bf16.mxu1 %v809_v0  ;;  %v701_v20 = vpack.c.bf16 %v161_v18, %v160_v17  ;;  %v163_v24 = vld [vmem:[#allocation2 + $0x98] sm:$0xff]  ;;  %v686_v25 = vpack.c.bf16 %v42_v22, %v41_v21  ;;  %v43_v27 = vld [vmem:[#allocation2 + $0x40] sm:$0xff]  ;;  %v44_v28 = vld [vmem:[#allocation2 + $0x48] sm:$0xff] }
  0x1a   :  { %v704_v26 = vpack.c.bf16 %v163_v24, %v162_v23  ;;  %v164_v29 = vld [vmem:[#allocation2 + $0xa0] sm:$0xff]  ;;  %v165_v30 = vld [vmem:[#allocation2 + $0xa8] sm:$0xff]  ;;  %v689_v31 = vpack.c.bf16 %v44_v28, %v43_v27  ;;  %v45_v33 = vld [vmem:[#allocation2 + $0x50] sm:$0xff] }
  0x1b   :  { %681 = vmatpush3.bf16.msra.mxu0 %v680_v13  ;;  %v707_v32 = vpack.c.bf16 %v165_v30, %v164_v29  ;;  %v46_v34 = vld [vmem:[#allocation2 + $0x58] sm:$0xff]  ;;  %v166_v35 = vld [vmem:[#allocation2 + $0xb0] sm:$0xff]  ;;  %v32_v37 = vld [vmem:[%s956_s2] sm:$0xff] }
  0x1c   :  { %699 = vmatpush3.bf16.msra.mxu1 %v698_v14  ;;  %682 = vmatprep.subr.bf16.mxu0 %v809_v0  ;;  %v167_v36 = vld [vmem:[#allocation2 + $0xb8] sm:$0xff]  ;;  %v34_v38 = vld [vmem:[%s956_s2 + $0x10] sm:$0xff]  ;;  %v692_v39 = vpack.c.bf16 %v46_v34, %v45_v33  ;;  %v33_v40 = vld [vmem:[%s956_s2 + $0x8] sm:$0xff] }
  0x1d   :  { %700 = vmatprep.subr.bf16.mxu1 %v809_v0  ;;  %49 = vperm.xlu0 %756, %v32_v37   ;;  %v710_v41 = vpack.c.bf16 %v167_v36, %v166_v35  ;;  %v255_v42 = vld [vmem:[#allocation2 + $0xc0] sm:$0xff]  ;;  %v256_v43 = vld [vmem:[#allocation2 + $0xc8] sm:$0xff]  ;;  %v257_v49 = vld [vmem:[#allocation2 + $0xd0] sm:$0xff] }
  0x1e   :  { %59 = vperm.xlu1 %757, %v34_v38   ;;  %v351_v44 = vld [vmem:[#allocation2 + $0x120] sm:$0xff]  ;;  %v352_v45 = vld [vmem:[#allocation2 + $0x128] sm:$0xff]  ;;  %v713_v47 = vpack.c.bf16 %v256_v43, %v255_v42  ;;  %v258_v50 = vld [vmem:[#allocation2 + $0xd8] sm:$0xff] }
  0x1f   :  { %684 = vmatpush3.bf16.msra.mxu0 %v683_v19  ;;  %v877_v46 = vld [vmem:[%s955_s1] sm:$0xff]  ;;  %v731_v48 = vpack.c.bf16 %v352_v45, %v351_v44  ;;  %v353_v51 = vld [vmem:[#allocation2 + $0x130] sm:$0xff]  ;;  %v354_v52 = vld [vmem:[#allocation2 + $0x138] sm:$0xff]  ;;  %v716_v53 = vpack.c.bf16 %v258_v50, %v257_v49 }
  0x20   :  { %702 = vmatpush3.bf16.msra.mxu1 %v701_v20  ;;  %685 = vmatprep.subr.bf16.mxu0 %v809_v0  ;;  %v888_v54 = vld [vmem:[%s955_s1 + $0x8] sm:$0xff]  ;;  %v734_v55 = vpack.c.bf16 %v354_v52, %v353_v51  ;;  %v259_v56 = vld [vmem:[#allocation2 + $0xe0] sm:$0xff]  ;;  %v31_v61 = vld [vmem:[%s955_s1 + $0x10] sm:$0xff]  ;;  %s813_s1 = smov [#allocation5]  }
  0x21   :  { %703 = vmatprep.subr.bf16.mxu1 %v809_v0  ;;  %54 = vperm.xlu0 %756, %v33_v40   ;;  %v260_v57 = vld [vmem:[#allocation2 + $0xe8] sm:$0xff]  ;;  %v355_v58 = vld [vmem:[#allocation2 + $0x140] sm:$0xff]  ;;  %v261_v63 = vld [vmem:[#allocation2 + $0xf0] sm:$0xff]  ;;  %s460_s9 = sshll.u32 %s813_s1, 4  ;;  %s461_s9 = int_to_ptr.vmem [resolvable:$true] %s460_s9 }
  0x22   :  { %v356_v59 = vld [vmem:[#allocation2 + $0x148] sm:$0xff]  ;;  %v719_v60 = vpack.c.bf16 %v260_v57, %v259_v56  ;;  %v262_v2 = vld [vmem:[#allocation2 + $0xf8] sm:$0xff]  ;;  %v357_v3 = vld [vmem:[#allocation2 + $0x150] sm:$0xff]  ;;  %s780_s10 = scalar_lea.vmem %s461_s9, 384  ;;  %p785_p9 = scmp.lt.s32.totalorder %s461_s9, %s461_s9 }
  0x23   :  { %687 = vmatpush3.bf16.msra.mxu0 %v686_v25  ;;  %v737_v62 = vpack.c.bf16 %v356_v59, %v355_v58  ;;  %v358_v4 = vld [vmem:[#allocation2 + $0x158] sm:$0xff]  ;;  %v722_v5 = vpack.c.bf16 %v262_v2, %v261_v63  ;;  %v263_v7 = vld [vmem:[#allocation2 + $0x100] sm:$0xff]  ;;  %v264_v8 = vld [vmem:[#allocation2 + $0x108] sm:$0xff]  ;;  %p781_p8 = scmp.ne.s32.totalorder %s461_s9, %s780_s10  ;;  %p786_p10 = scmp.lt.s32.totalorder %s780_s10, %s780_s10 }
  0x24   :  { %705 = vmatpush3.bf16.msra.mxu1 %v704_v26  ;;  %688 = vmatprep.subr.bf16.mxu0 %v809_v0  ;;  %v740_v6 = vpack.c.bf16 %v358_v4, %v357_v3  ;;  %v359_v9 = vld [vmem:[#allocation2 + $0x160] sm:$0xff]  ;;  %v360_v10 = vld [vmem:[#allocation2 + $0x168] sm:$0xff]  ;;  %v725_v11 = vpack.c.bf16 %v264_v8, %v263_v7  ;;  %v265_v13 = vld [vmem:[#allocation2 + $0x110] sm:$0xff] }
  0x25   :  { %706 = vmatprep.subr.bf16.mxu1 %v809_v0  ;;  %v743_v12 = vpack.c.bf16 %v360_v10, %v359_v9  ;;  %v266_v14 = vld [vmem:[#allocation2 + $0x118] sm:$0xff]  ;;  %v361_v15 = vld [vmem:[#allocation2 + $0x170] sm:$0xff]  ;;  %p787_p11 = por %p786_p10, %p785_p9 }
  0x26   :  { %v362_v16 = vld [vmem:[#allocation2 + $0x178] sm:$0xff]  ;;  %v728_v17 = vpack.c.bf16 %v266_v14, %v265_v13 }
  0x27   :  { %690 = vmatpush3.bf16.msra.mxu0 %v689_v31  ;;  %v746_v18 = vpack.c.bf16 %v362_v16, %v361_v15  ;;  %p788_p12 = pnand %p787_p11, %p781_p8 }
  0x28   :  { %708 = vmatpush3.bf16.msra.mxu1 %v707_v32  ;;  %691 = vmatprep.subr.bf16.mxu0 %v809_v0 }
  0x29   :  { %709 = vmatprep.subr.bf16.mxu1 %v809_v0 }
  0x2b   :  { %693 = vmatpush3.bf16.msra.mxu0 %v692_v39 }
  0x2c   :  { %711 = vmatpush3.bf16.msra.mxu1 %v710_v41  ;;  %712 = vmatprep.subr.bf16.mxu0 %v809_v0 }
  0x2d   :  { %730 = vmatprep.subr.bf16.mxu1 %v809_v0 }
  0x2e   :  { %569 = vmatmul.mubr.msk.f32.vlgmr.msra.gmra.mrb[0].mxu0 %vm62_vm1, %v877_v46 }
  0x2f   :  { %602 = vmatmul.mubr.msk.f32.vlgmr.msra.gmra.mrb[0].mxu1 %vm62_vm1, %v877_v46  ;;  %714 = vmatpush3.bf16.msra.mxu0 %v713_v47 }
  0x30   :  { %732 = vmatpush3.bf16.msra.mxu1 %v731_v48  ;;  %715 = vmatprep.subr.bf16.mxu0 %v809_v0 }
  0x31   :  { %733 = vmatprep.subr.bf16.mxu1 %v809_v0  ;;  %571 = vmatprep.mubr.msk.f32.mxu0 %vm810_vm0, %v811_v1 }
  0x32   :  { %604 = vmatprep.mubr.msk.f32.mxu1 %vm810_vm0, %v811_v1  ;;  %572 = vmatmul.mubr.msk.f32.gmra.mrb[2].mxu0 %vm62_vm1, %v888_v54 }
  0x33   :  { %717 = vmatpush3.bf16.msra.mxu0 %v716_v53  ;;  %605 = vmatmul.mubr.msk.f32.gmra.mrb[2].mxu1 %vm62_vm1, %v888_v54 }
  0x34   :  { %735 = vmatpush3.bf16.msra.mxu1 %v734_v55  ;;  %718 = vmatprep.subr.bf16.mxu0 %v809_v0 }
  0x35   :  { %736 = vmatprep.subr.bf16.mxu1 %v809_v0  ;;  %574 = vmatprep.mubr.msk.f32.mxu0 %vm810_vm0, %v811_v1 }
  0x36   :  { %607 = vmatprep.mubr.msk.f32.mxu1 %vm810_vm0, %v811_v1  ;;  %575 = vmatmul.mubr.msk.f32.gmra.mrb[4].mxu0 %vm62_vm1, %v31_v61 }
  0x37   :  { %720 = vmatpush3.bf16.msra.mxu0 %v719_v60  ;;  %608 = vmatmul.mubr.msk.f32.gmra.mrb[4].mxu1 %vm62_vm1, %v31_v61 }
  0x38   :  { %738 = vmatpush3.bf16.msra.mxu1 %v737_v62  ;;  %721 = vmatprep.subr.bf16.mxu0 %v809_v0 }
  0x39   :  { %739 = vmatprep.subr.bf16.mxu1 %v809_v0  ;;  %634 = vmatprep.mubr.msk.f32.mxu0 %vm810_vm0, %v811_v1 }
  0x3a   :  { %667 = vmatprep.mubr.msk.f32.mxu1 %vm810_vm0, %v811_v1 }
  0x3b   :  { %723 = vmatpush3.bf16.msra.mxu0 %v722_v5 }
  0x3c   :  { %741 = vmatpush3.bf16.msra.mxu1 %v740_v6  ;;  %724 = vmatprep.subr.bf16.mxu0 %v809_v0 }
  0x3d   :  { %742 = vmatprep.subr.bf16.mxu1 %v809_v0 }
  0x3f   :  { %726 = vmatpush3.bf16.msra.mxu0 %v725_v11 }
  0x40   :  { %744 = vmatpush3.bf16.msra.mxu1 %v743_v12  ;;  %727 = vmatprep.subr.bf16.mxu0 %v809_v0 }
  0x41   :  { %745 = vmatprep.subr.bf16.mxu1 %v809_v0 }
  0x43   :  { %729 = vmatpush3.bf16.msra.mxu0 %v728_v17 }
  0x44   :  { %747 = vmatpush3.bf16.msra.mxu1 %v746_v18 }
  0x46   :  { %635 = vmatmul.mubr.msk.f32.vlgmr.msra.gmra.mrb[6].mxu0 %vm62_vm1, %v877_v46 }
  0x47   :  { %668 = vmatmul.mubr.msk.f32.vlgmr.msra.gmra.mrb[6].mxu1 %vm62_vm1, %v877_v46  ;;  %637 = vmatprep.mubr.msk.f32.mxu0 %vm810_vm0, %v811_v1 }
  0x48   :  { %670 = vmatprep.mubr.msk.f32.mxu1 %vm810_vm0, %v811_v1 }
  0x4a   :  { %638 = vmatmul.mubr.msk.f32.gmra.mrb[8].mxu0 %vm62_vm1, %v888_v54 }
  0x4b   :  { %671 = vmatmul.mubr.msk.f32.gmra.mrb[8].mxu1 %vm62_vm1, %v888_v54  ;;  %640 = vmatprep.mubr.msk.f32.mxu0 %vm810_vm0, %v811_v1 }
  0x4c   :  { %673 = vmatprep.mubr.msk.f32.mxu1 %vm810_vm0, %v811_v1 }
  0x4e   :  { %641 = vmatmul.mubr.msk.f32.gmra.mrb[10].mxu0 %vm62_vm1, %v31_v61 }
  0x4f   :  { %674 = vmatmul.mubr.msk.f32.gmra.mrb[10].mxu1 %vm62_vm1, %v31_v61 }
  0x9c   :  { %v50_v0 = vpop.permute.xlu0 %49 }
  0x9d   :  { %v60_v33 = vpop.permute.xlu1 %59 }
  0xa0   :  { %v55_v25 = vpop.permute.xlu0 %54 }
 0x101   :  { %v138_v19 = vpop.f32.mrb[0].mxu0 }
 0x102   :  { %v234_v20 = vpop.f32.mrb[0].mxu1  ;;  %v139_v21 = vadd.f32 %v138_v19, %v50_v0  ;;  %v570_v22 = vpop.f32.mrb[1].mxu0 }
 0x103   :  { %v235_v23 = vadd.f32 %v234_v20, %v50_v0  ;;  %v603_v24 = vpop.f32.mrb[1].mxu1 }
 0x104   :  { %v152_v26 = vmax.f32 %v139_v21, 0.0 }
 0x105   :  { %v248_v27 = vmax.f32 %v235_v23, 0.0  ;;  %v143_v28 = vpop.f32.mrb[2].mxu0 }
 0x106   :  { %v239_v29 = vpop.f32.mrb[2].mxu1  ;;  %v144_v30 = vadd.f32 %v143_v28, %v55_v25  ;;  %v573_v31 = vpop.f32.mrb[3].mxu0 }
 0x107   :  { %v240_v32 = vadd.f32 %v239_v29, %v55_v25  ;;  %v606_v1 = vpop.f32.mrb[3].mxu1  ;;  %v251_v34 = vmax.f32 %v152_v26, %v248_v27 }
 0x108   :  { %v153_v35 = vmax.f32 %v144_v30, 0.0 }
 0x109   :  { %v249_v36 = vmax.f32 %v240_v32, 0.0  ;;  %v148_v37 = vpop.f32.mrb[4].mxu0 }
 0x10a   :  { %v244_v38 = vpop.f32.mrb[4].mxu1  ;;  %v149_v39 = vadd.f32 %v148_v37, %v60_v33  ;;  %v576_v40 = vpop.f32.mrb[5].mxu0 }
 0x10b   :  { %v252_v41 = vmax.f32 %v153_v35, %v249_v36  ;;  %v245_v42 = vadd.f32 %v244_v38, %v60_v33  ;;  %v609_v43 = vpop.f32.mrb[5].mxu1 }
 0x10c   :  { %v154_v44 = vmax.f32 %v149_v39, 0.0 }
 0x10d   :  { %v250_v45 = vmax.f32 %v245_v42, 0.0 }
 0x10f   :  { %v253_v46 = vmax.f32 %v154_v44, %v250_v45 }
 0x119   :  { %v333_v47 = vpop.f32.mrb[6].mxu0 }
 0x11a   :  { %v334_v48 = vadd.f32 %v333_v47, %v50_v0  ;;  %v429_v49 = vpop.f32.mrb[6].mxu1  ;;  %v636_v50 = vpop.f32.mrb[7].mxu0 }
 0x11b   :  { %v430_v51 = vadd.f32 %v429_v49, %v50_v0  ;;  %v669_v52 = vpop.f32.mrb[7].mxu1 }
 0x11c   :  { %v347_v53 = vmax.f32 %v334_v48, 0.0 }
 0x11d   :  { %v443_v54 = vmax.f32 %v430_v51, 0.0  ;;  %v338_v55 = vpop.f32.mrb[8].mxu0 }
 0x11e   :  { %v339_v56 = vadd.f32 %v338_v55, %v55_v25  ;;  %v434_v57 = vpop.f32.mrb[8].mxu1  ;;  %v639_v58 = vpop.f32.mrb[9].mxu0 }
 0x11f   :  { %v446_v59 = vmax.f32 %v347_v53, %v443_v54  ;;  %v435_v60 = vadd.f32 %v434_v57, %v55_v25  ;;  %v672_v61 = vpop.f32.mrb[9].mxu1 }
 0x120   :  { %v348_v62 = vmax.f32 %v339_v56, 0.0 }
 0x121   :  { %v449_v63 = vmax.f32 %v251_v34, %v446_v59  ;;  %v444_v2 = vmax.f32 %v435_v60, 0.0  ;;  %v343_v3 = vpop.f32.mrb[10].mxu0 }
 0x122   :  { %v344_v4 = vadd.f32 %v343_v3, %v60_v33  ;;  %v439_v5 = vpop.f32.mrb[10].mxu1  ;;  %v642_v6 = vpop.f32.mrb[11].mxu0 }
 0x123   :  { %452 = vst [vmem:[#allocation5] sm:$0xff] %v449_v63  ;;  %v447_v7 = vmax.f32 %v348_v62, %v444_v2  ;;  %v440_v8 = vadd.f32 %v439_v5, %v60_v33  ;;  %v675_v9 = vpop.f32.mrb[11].mxu1 }
 0x124   :  { %v349_v10 = vmax.f32 %v344_v4, 0.0 }
 0x125   :  { %v450_v11 = vmax.f32 %v252_v41, %v447_v7  ;;  %v445_v12 = vmax.f32 %v440_v8, 0.0 }
 0x127   :  { %453 = vst [vmem:[#allocation5 + $0x8] sm:$0xff] %v450_v11  ;;  %v448_v13 = vmax.f32 %v349_v10, %v445_v12 }
 0x129   :  { %v451_v14 = vmax.f32 %v253_v46, %v448_v13 }
 0x12b   :  { %454 = vst [vmem:[#allocation5 + $0x10] sm:$0xff] %v451_v14 }
 0x12c   :  { %791 = shalt.err (!%p788_p12)
}
 0x12d   :  { %s792_s13 = scalar_lea.hbm %s957_s3, 384 }
 0x12e   :  { %p793_p13 = scmp.ne.s32.totalorder %s957_s3, %s792_s13  ;;  %p796_p0 = scmp.lt.u32.totalorder %s792_s13, %s957_s3 }
 0x130   :  { %p798_p1 = pnand %p796_p0, %p793_p13 }
 0x132   :  { %801 = shalt.err (!%p798_p1)
}
 0x133   :  { %466 = dma.vmem_to_hbm [thread:$0]  %s461_s9, 384, %s957_s3, [#allocation4], %s807_s22, %s807_s22, %s808_s23  }
 0x134   :  { %804 = dma.done.wait [#allocation4], 384  }
 0x135   :  { %805 = vsyncadd [#allocation4], 4294966912 }
 0x136   :  { %470 = vsyncpa [#allocation3], 1 }
 0x137   :  { %471 = vsyncpa [#allocation4], 1 }

</bundles_post_ra>
